<compile_context>
chip_gen: v6e
topology: v6e:2x2x1
jax: 0.10.0
libtpu: 0.0.40
codegen_flags: <defaults>
</compile_context>

<pallas_src>
import functools
import math

import jax
import jax.numpy as jnp
from jax.experimental import pallas as pl
from jax.experimental.pallas import tpu as pltpu


# ----------------------------------------------------------------------------- helpers
def _round_up(x, m):
    return (x + m - 1) // m * m


def _pad2d(x, rows, cols):
    r, c = x.shape
    return jnp.pad(x, ((0, rows - r), (0, cols - c)))


def _pick_tile(dim_padded, candidates):
    for c in candidates:
        if dim_padded % c == 0:
            return c
    return dim_padded  # unreachable: dim_padded is always a multiple of 128


def _pick_parallel_tiles(ndst_p, out_p):
    """Output-tile sizes; guarantee >=2 blocks along a parallel axis for v7x's 2nd core."""
    tm = _pick_tile(ndst_p, (256, 128))
    tn = _pick_tile(out_p, (256, 128))
    if ndst_p // tm == 1 and out_p // tn == 1:
        # ndst_p is a multiple of 128, so ndst_p//2 >= 64 stays sublane (8) aligned.
        tm = max(8, ndst_p // 2)
    return tm, tn


# Conservative scoped-VMEM budget valid on v5e (128 MiB), v6e (128 MiB) and v7x (64 MiB).
_VMEM_LIMIT_BYTES = 32 * 1024 * 1024


# ----------------------------------------------------------------------------- kernels
def _root_kernel(xd_ref, wr_ref, b_ref, r_ref):
    """R = X_dst @ W_r + b.  Accumulates directly into the f32 output block
    (its block index is k-invariant, so it is VMEM-resident across the reduction)."""
    k = pl.program_id(2)

    @pl.when(k == 0)
    def _():
        r_ref[...] = jnp.zeros_like(r_ref) + b_ref[...]   # init with (broadcast) bias

    r_ref[...] += jnp.dot(xd_ref[...], wr_ref[...],
                          preferred_element_type=jnp.float32)


def _fused_sage_kernel(a_ref, xs_ref, wl_ref, r_ref, inv_ref, o_ref, *acc,
                       apply_relu):
    """out = inv_deg * sum_k A01[i,k] @ (X_src[k] @ W_l[:,j]) + R   (+ optional ReLU).

    Projection is fused into the src-reduction loop (Yk never hits HBM).  The root
    term + bias arrive precomputed in R; the epilogue is scale/add/ReLU/store only.
    When called without a scratch ref (f32 output) the accumulation happens directly
    in o_ref; with a scratch ref (bf16 output) it happens in the f32 scratch.
    """
    acc_ref = acc[0] if acc else o_ref
    k = pl.program_id(2)

    @pl.when(k == 0)
    def _():
        acc_ref[...] = jnp.zeros_like(acc_ref)

    # Projected src chunk (bf16 MXU operands, f32 accumulation), consumed immediately.
    yk = jnp.dot(xs_ref[...], wl_ref[...],
                 preferred_element_type=jnp.float32).astype(jnp.bfloat16)
    # Neighbor-sum partial: A01 is 0/1 counts (exact in bf16 up to multiplicity 256).
    acc_ref[...] += jnp.dot(a_ref[...], yk, preferred_element_type=jnp.float32)

    @pl.when(k == pl.num_programs(2) - 1)
    def _():
        out = acc_ref[...] * inv_ref[...] + r_ref[...]     # f32 mean + root + bias
        if apply_relu:
            out = jnp.maximum(out, 0.0)
        o_ref[...] = out.astype(o_ref.dtype)


# ----------------------------------------------------------------------------- layer
def sage_conv_layer(h_pad, edge_index, num_src, num_dst, wl_p, wr_p, b_p, *,
                    apply_relu, out_dtype):
    """One SAGEConv(mean) layer on padded bf16 activations.

    h_pad : (nsrc_p, in_p) bf16 padded src features (padded rows/cols are junk/zero).
    Returns padded (ndst_p, out_p) activations in `out_dtype` (no slicing here).
    """
    nsrc_p, in_p = h_pad.shape
    in_p2, out_p = wl_p.shape
    assert in_p == in_p2
    assert nsrc_p == _round_up(num_src, 128)
    ndst_p = _round_up(num_dst, 128)
    assert ndst_p <= nsrc_p

    tm, tn = _pick_parallel_tiles(ndst_p, out_p)
    # Reduction-axis tiles: shrink these first (never tm/tn) if VMEM-pressured (v7x).
    tk_src = _pick_tile(nsrc_p, (512, 256, 128))
    tk_in = _pick_tile(in_p, (512, 256, 128))

    # ---- glue: 0/1 adjacency + f32 reciprocal degree ---------------------------------
    # TODO(synk): replace dense adjacency + scatter with CSR / scalar-prefetch gather
    # for production fanouts (this is the dominant production optimization).
    src, dst = edge_index[0], edge_index[1]
    a01 = jnp.zeros((ndst_p, nsrc_p), jnp.float32).at[dst, src].add(1.0)
    deg = a01.sum(axis=1, keepdims=True)                      # messages per dst (f32)
    inv_deg = jnp.where(deg > 0, 1.0 / jnp.maximum(deg, 1.0), 0.0).astype(jnp.float32)
    a01_bf = a01.astype(jnp.bfloat16)                         # small integer counts: exact

    dims = pltpu.CompilerParams(
        dimension_semantics=("parallel", "parallel", "arbitrary"),
        vmem_limit_bytes=_VMEM_LIMIT_BYTES)

    # ---- kernel 1: root term R = X_dst @ W_r + b  (small; no scratch, no epilogue) ----
    # X_dst rows are the first ndst_p rows of h_pad; the grid simply never visits the rest.
    r = pl.pallas_call(
        _root_kernel,
        out_shape=jax.ShapeDtypeStruct((ndst_p, out_p), jnp.float32),
        grid_spec=pltpu.PrefetchScalarGridSpec(
            num_scalar_prefetch=0,
            grid=(ndst_p // tm, out_p // tn, in_p // tk_in),
            in_specs=[pl.BlockSpec((tm, tk_in), lambda i, j, k: (i, k)),   # X_dst chunk
                      pl.BlockSpec((tk_in, tn), lambda i, j, k: (k, j)),   # W_r chunk
                      pl.BlockSpec((1, tn),     lambda i, j, k: (0, j))],  # bias (f32)
            out_specs=pl.BlockSpec((tm, tn), lambda i, j, k: (i, j)),
            scratch_shapes=()),
        compiler_params=dims,
        cost_estimate=pl.CostEstimate(
            flops=2 * ndst_p * out_p * in_p, transcendentals=0,
            bytes_accessed=int(ndst_p * in_p * 2 + in_p * out_p * 2
                               + out_p * 4 + ndst_p * out_p * 4)),
    )(h_pad, wr_p, b_p)

    # ---- kernel 2: fused projection + mean-aggregation + epilogue ---------------------
    out_is_f32 = jnp.dtype(out_dtype) == jnp.dtype(jnp.float32)
    scratch = () if out_is_f32 else (pltpu.VMEM((tm, tn), jnp.float32),)

    n_i = ndst_p // tm
    flops = 2 * n_i * nsrc_p * in_p * out_p + 2 * ndst_p * nsrc_p * out_p
    bytes_acc = (a01_bf.size * 2 + n_i * h_pad.size * 2 + wl_p.size * 2
                 + r.size * 4 + inv_deg.size * 4
                 + ndst_p * out_p * jnp.dtype(out_dtype).itemsize)

    out = pl.pallas_call(
        functools.partial(_fused_sage_kernel, apply_relu=apply_relu),
        out_shape=jax.ShapeDtypeStruct((ndst_p, out_p), out_dtype),
        grid_spec=pltpu.PrefetchScalarGridSpec(
            num_scalar_prefetch=0,
            grid=(ndst_p // tm, out_p // tn, nsrc_p // tk_src),
            in_specs=[
                pl.BlockSpec((tm, tk_src),   lambda i, j, k: (i, k)),  # A01  (0/1, bf16)
                pl.BlockSpec((tk_src, in_p), lambda i, j, k: (k, 0)),  # X_src chunk (bf16)
                pl.BlockSpec((in_p, tn),     lambda i, j, k: (0, j)),  # W_l (j-resident)
                pl.BlockSpec((tm, tn),       lambda i, j, k: (i, j)),  # R = Xd@Wr + b (f32)
                pl.BlockSpec((tm, 1),        lambda i, j, k: (i, 0)),  # 1/deg (f32)
            ],
            out_specs=pl.BlockSpec((tm, tn), lambda i, j, k: (i, j)),
            scratch_shapes=scratch),
        compiler_params=dims,
        cost_estimate=pl.CostEstimate(flops=int(flops), transcendentals=0,
                                      bytes_accessed=int(bytes_acc)),
    )(a01_bf, h_pad, wl_p, r, inv_deg)

    return out


# ----------------------------------------------------------------------------- model
class GraphSAGEPallas:
    """Forward pass of the PyTorch GraphSAGE module (stack of SAGEConv layers)."""

    def __init__(self, in_size, hidden_size, n_layers, key):
        sizes = [in_size] + [hidden_size] * n_layers
        self.params = []         # f32 originals (for the reference check)
        self.padded_params = []  # pre-padded / pre-cast once, hoisted out of forward
        for i in range(n_layers):
            key, k1, k2, k3 = jax.random.split(key, 4)
            bound = 1.0 / math.sqrt(sizes[i])
            w_l = jax.random.uniform(k1, (sizes[i], sizes[i + 1]), jnp.float32, -bound, bound)
            w_r = jax.random.uniform(k2, (sizes[i], sizes[i + 1]), jnp.float32, -bound, bound)
            bia = jax.random.uniform(k3, (sizes[i + 1],), jnp.float32, -bound, bound)
            self.params.append((w_l, w_r, bia))
            in_p = _round_up(sizes[i], 128)
            out_p = _round_up(sizes[i + 1], 128)
            self.padded_params.append((
                _pad2d(w_l, in_p, out_p).astype(jnp.bfloat16),
                _pad2d(w_r, in_p, out_p).astype(jnp.bfloat16),
                jnp.pad(bia, (0, out_p - sizes[i + 1])).reshape(1, out_p),  # f32
            ))
        self.out_feats = sizes[1:]
        # NOTE: the PyTorch module's `self.predictor` MLP is never used in forward(); omitted.

    def __call__(self, subgraphs, x):
        n_layers = len(self.padded_params)
        num_src0 = subgraphs[0][1]
        in_p0 = self.padded_params[0][0].shape[0]
        # Pad/cast the input once; activations stay padded bf16 until the final slice.
        h = _pad2d(x.astype(jnp.float32),
                   _round_up(num_src0, 128), in_p0).astype(jnp.bfloat16)
        for i, ((wl_p, wr_p, b_p), (edge_index, num_src, num_dst)) in enumerate(
                zip(self.padded_params, subgraphs)):
            last = (i == n_layers - 1)
            h = sage_conv_layer(h, edge_index, num_src, num_dst, wl_p, wr_p, b_p,
                                apply_relu=not last,
                                out_dtype=jnp.float32 if last else jnp.bfloat16)
        num_dst_final = subgraphs[-1][2]
        return h[:num_dst_final, :self.out_feats[-1]]


# ----------------------------------------------------------------------------- reference
def _reference_sage(x, subgraphs, params):
    h = x
    n_layers = len(params)
    for i, ((w_l, w_r, bia), (edge_index, num_src, num_dst)) in enumerate(
            zip(params, subgraphs)):
        src, dst = edge_index[0], edge_index[1]
        msg_sum = jnp.zeros((num_dst, h.shape[1]), jnp.float32).at[dst].add(h[src])
        deg = jnp.zeros((num_dst,), jnp.float32).at[dst].add(1.0)
        agg = jnp.where(deg[:, None] > 0,
                        msg_sum / jnp.maximum(deg[:, None], 1.0), 0.0)
        out = agg @ w_l + h[:num_dst] @ w_r + bia
        if i != n_layers - 1:
            out = jax.nn.relu(out)
        h = out
    return h


# ----------------------------------------------------------------------------- demo
if __name__ == "__main__":
    key = jax.random.PRNGKey(0)
    in_size, hidden, n_layers = 32, 32, 2
    n0, n1, n2 = 48, 16, 8          # shrinking sampled-node counts per hop
    e0, e1 = 160, 48                # edges in each sampled bipartite subgraph

    key, kx, ks0, kd0, ks1, kd1, km = jax.random.split(key, 7)
    x = jax.random.normal(kx, (n0, in_size), jnp.float32)

    edge0 = jnp.stack([jax.random.randint(ks0, (e0,), 0, n0),
                       jax.random.randint(kd0, (e0,), 0, n1)]).astype(jnp.int32)
    edge1 = jnp.stack([jax.random.randint(ks1, (e1,), 0, n1),
                       jax.random.randint(kd1, (e1,), 0, n2)]).astype(jnp.int32)
    subgraphs = [(edge0, n0, n1), (edge1, n1, n2)]

    model = GraphSAGEPallas(in_size, hidden, n_layers, km)

    out = model(subgraphs, x)
    out = jax.block_until_ready(out)

    ref = _reference_sage(x, subgraphs, model.params)
    assert out.shape == (n2, hidden), out.shape
    assert bool(jnp.allclose(out, ref, atol=3e-2, rtol=3e-2)), \
        float(jnp.max(jnp.abs(out - ref)))

    print("KERNEL_OK")
</pallas_src>

<mosaic_0001>
module attributes {stable_mosaic.version = 11 : i64} {
  func.func @_root_kernel(%arg0: i32, %arg1: i32, %arg2: i32, %arg3: memref<64x128xbf16, #tpu.memory_space<vmem>>, %arg4: memref<128x128xbf16, #tpu.memory_space<vmem>>, %arg5: memref<1x128xf32, #tpu.memory_space<vmem>>, %arg6: memref<64x128xf32, #tpu.memory_space<vmem>>) attributes {dimension_semantics = [#tpu.dimension_semantics<parallel>, #tpu.dimension_semantics<parallel>, #tpu.dimension_semantics<arbitrary>], iteration_bounds = array<i64: 2, 1, 1>, scalar_prefetch = 0 : i64, scratch_operands = 0 : i64, tpu.core_type = #tpu.core_type<tc>, window_params = [{transform_indices = @transform_0, window_bounds = array<i64: 64, 128>}, {transform_indices = @transform_1, window_bounds = array<i64: 128, 128>}, {transform_indices = @transform_2, window_bounds = array<i64: 1, 128>}, {transform_indices = @transform_3, window_bounds = array<i64: 64, 128>}]} {
    %c0_i32 = arith.constant 0 : i32
    %0 = arith.cmpi eq, %arg2, %c0_i32 : i32
    %1 = arith.extui %0 : i1 to i32
    %c0_i32_0 = arith.constant 0 : i32
    %2 = arith.cmpi ne, %1, %c0_i32_0 : i32
    scf.if %2 {
      %cst_8 = arith.constant 0.000000e+00 : f32
      %9 = vector.broadcast %cst_8 : f32 to vector<64x128xf32>
      %c0_9 = arith.constant 0 : index
      %c0_10 = arith.constant 0 : index
      %10 = vector.load %arg5[%c0_9, %c0_10] : memref<1x128xf32, #tpu.memory_space<vmem>>, vector<1x128xf32>
      %11 = vector.broadcast %10 : vector<1x128xf32> to vector<64x128xf32>
      %12 = arith.addf %9, %11 : vector<64x128xf32>
      %c0_11 = arith.constant 0 : index
      %c0_12 = arith.constant 0 : index
      %13 = vector.load %arg6[%c0_11, %c0_12] : memref<64x128xf32, #tpu.memory_space<vmem>>, vector<64x128xf32>
      tpu.vector_store %arg6[%c0_11, %c0_12], %12 {strides = array<i32>} : memref<64x128xf32, #tpu.memory_space<vmem>>, vector<64x128xf32>,
    } else {
    }
    %c0 = arith.constant 0 : index
    %c0_1 = arith.constant 0 : index
    %3 = vector.load %arg6[%c0, %c0_1] : memref<64x128xf32, #tpu.memory_space<vmem>>, vector<64x128xf32>
    %c0_2 = arith.constant 0 : index
    %c0_3 = arith.constant 0 : index
    %4 = vector.load %arg3[%c0_2, %c0_3] : memref<64x128xbf16, #tpu.memory_space<vmem>>, vector<64x128xbf16>
    %c0_4 = arith.constant 0 : index
    %c0_5 = arith.constant 0 : index
    %5 = vector.load %arg4[%c0_4, %c0_5] : memref<128x128xbf16, #tpu.memory_space<vmem>>, vector<128x128xbf16>
    %cst = arith.constant dense<0.000000e+00> : vector<64x128xf32>
    %6 = tpu.matmul %4, %5, %cst {dimension_numbers = #tpu.dot_dimension_numbers<[1], [0], [0], [1], [0, 0, 1, 1], [], []>} : vector<64x128xbf16>, vector<128x128xbf16>, vector<64x128xf32> -> vector<64x128xf32>
    %7 = arith.addf %3, %6 : vector<64x128xf32>
    %c0_6 = arith.constant 0 : index
    %c0_7 = arith.constant 0 : index
    %8 = vector.load %arg6[%c0_6, %c0_7] : memref<64x128xf32, #tpu.memory_space<vmem>>, vector<64x128xf32>
    tpu.vector_store %arg6[%c0_6, %c0_7], %7 {strides = array<i32>} : memref<64x128xf32, #tpu.memory_space<vmem>>, vector<64x128xf32>,
    return
  }
  func.func @transform_0(%arg0: i32, %arg1: i32, %arg2: i32) -> (i32, i32) {
    %c0_i32 = arith.constant 0 : i32
    return %arg0, %arg2 : i32, i32
  }
  func.func @transform_1(%arg0: i32, %arg1: i32, %arg2: i32) -> (i32, i32) {
    %c0_i32 = arith.constant 0 : i32
    return %arg2, %arg1 : i32, i32
  }
  func.func @transform_2(%arg0: i32, %arg1: i32, %arg2: i32) -> (i32, i32) {
    %c0_i32 = arith.constant 0 : i32
    %c0_i32_0 = arith.constant 0 : i32
    return %c0_i32, %arg1 : i32, i32
  }
  func.func @transform_3(%arg0: i32, %arg1: i32, %arg2: i32) -> (i32, i32) {
    %c0_i32 = arith.constant 0 : i32
    return %arg0, %arg1 : i32, i32
  }
}

</mosaic_0001>

<bundles_post_ra>
// kernel: tpu_custom_call.1
= control target key start
LH: loop header
LB: loop body
LE: loop exit
PB: predicated region body
PF: predicated region fallthrough
CT: control target
= control target key end

     0   :  { %8 = vsyncpa [#allocation3], 0  ;;  %s1129_s0 = inlined_call_operand.hbm [shape: bf16[128,128], index: 0, kind: input, shape index: {}]   ;;  %s1130_s1 = inlined_call_operand.hbm [shape: bf16[128,128], index: 1, kind: input, shape index: {}]   ;;  %s1131_s2 = inlined_call_operand.vmem [shape: f32[1,128], index: 2, kind: input, shape index: {}]   ;;  %s1132_s3 = inlined_call_operand.hbm [shape: f32[128,128], index: 3, kind: output, shape index: {}]  }
   0x1   :  { %10 = vsyncpa [#allocation3 + $0x1], 0 }
   0x2   :  { %11 = vsyncpa [#allocation6], 0 }
   0x3   :  { %12 = vsyncpa [#allocation4], 0 }
   0x4   :  { %14 = vsyncpa [#allocation4 + $0x1], 0  ;;  %s932_s12 = smov 0   ;;  %s934_s13 = smov 0  }
   0x5   :  { %s936_s14 = smov 0   ;;  %s938_s15 = smov 0  }
   0x6   :  { %s940_s16 = smov 0   ;;  %s942_s17 = smov 0  }
   0x7 LB: > { %s591_s18 = sadd.s32 4294967295, %s903_s17   ;;  %s592_s19 = sadd.s32 4294967294, %s903_s17   ;;  %s903_s17 = sphi %s942_s17, %s20_s17   ;;  %s899_s16 = sphi %s940_s16, %s1154_s16   ;;  %s895_s15 = sphi %s938_s15, %s1153_s15   ;;  %s891_s14 = sphi %s936_s14, %s1152_s14   ;;  %s887_s13 = sphi %s934_s13, %s1151_s13   ;;  %s883_s12 = sphi %s932_s12, %s1150_s12  }
   0x8   : > { %p61_p0 = scmp.ne.s32.totalorder %s887_s13, %s883_s12  ;;  %p966_p1 = scmp.eq.s32.totalorder %s591_s18, 0 }
   0x9   : > { %p970_p2 = scmp.eq.s32.totalorder %s591_s18, 1  ;;  %p147_p3 = scmp.eq.s32.totalorder %s592_s19, 1 }
   0xa   : > { %p976_p4 = por %p966_p1, %p61_p0  ;;  %p593_p5 = scmp.ge.s32.totalorder %s903_s17, 1 }
   0xb   : > { %p981_p6 = por %p147_p3, %p61_p0  ;;  %p154_p7 = scmp.lt.s32.totalorder %s903_s17, 3 }
   0xc   : > { %s1138_s22 = scalar_select %p976_p4, 1, 0 }
   0xd   : > { %s1139_s23 = scalar_select %p981_p6, 1, 0 }
   0xe   : > { %p986_p8 = pnand %p593_p5, %p154_p7  ;;  %s905_s25 = smov [#allocation5]  }
   0xf   : > { %s170_s26 = sshll.u32 %s905_s25, 4  ;;  %s39_s28 = sadd.s32 1, %s899_s16  ;;  %s171_s26 = int_to_ptr.vmem [resolvable:$true] %s170_s26 }
  0x10   : > { %p684_p9 = pneg %p986_p8  ;;  %s776_s29 = scalar_lea.vmem %s171_s26, 1024 }
  0x11   : > { %p777_p13 = scmp.ne.s32.totalorder %s171_s26, %s776_s29  ;;  %p784_p5 = scmp.lt.s32.totalorder %s171_s26, %s171_s26 }
  0x12   : > { %p995_p11 = pnand %p684_p9, %p966_p1  ;;  %p785_p7 = scmp.lt.s32.totalorder %s776_s29, %s776_s29 }
  0x14   : > { %p767_p12 = pneg %p995_p11  ;;  %p786_p6 = por %p785_p7, %p784_p5 }
  0x16   : > { %p779_p0 = pnand %p777_p13, %p767_p12 }
  0x18   : > { %p780_p3 = pneg %p779_p0 }
  0x1a   : > { %p787_p4 = pnand %p786_p6, %p780_p3 }
  0x1c   : > { %790 = shalt.err (!%p787_p4)
}
  0x1d   : > { %s1134_s30 = smov 64   ;;  %s1135_s4 = smov 4  }
  0x1e   : > { %687 = dma.hbm_to_vmem [thread:$0]  (!%p995_p11), %s1130_s1, 1024, %s171_s26, [#allocation6], %s1134_s30, %s1134_s30, %s1135_s4  }
  0x1f   : > { %p41_p4 = scmp.ge.s32.totalorder %s39_s28, 2  ;;  %s48_s7 = sadd.s32 1, %s891_s14 }
  0x20   : > { %p55_p6 = scmp.ne.s32.totalorder %s891_s14, %s887_s13  ;;  %p56_p9 = scmp.eq.s32.totalorder %s903_s17, 0 }
  0x21   : > { %s1156_s28 = smov (%p41_p4, %s39_s28), 0  ;;  %p697_p0 = scmp.lt.s32.totalorder %s903_s17, 2 }
  0x22   : > { %p1016_p12 = por %p56_p9, %p55_p6  ;;  %p1022_p13 = por %p970_p2, %p55_p6 }
  0x23   : > { %s43_s10 = ssub.s32 %s899_s16, %s1156_s28  ;;  %s190_s11 = sand.u32 1, %s891_s14  }
  0x24   : > { %p46_p11 = scmp.eq.s32.totalorder %s43_s10, 0  ;;  %s597_s18 = sshll.u32 %s190_s11, 5 }
  0x25   : > { %s622_s25 = sshll.u32 %s899_s16, 9  ;;  %s194_s5 = scalar_lea.vmem [#allocation2], %s597_s18 }
  0x26   : > { %s1031_s19 = scalar_select %p46_p11, %s891_s14, %s48_s7  }
  0x27   : > { %s201_s29 = scalar_lea.hbm %s1129_s0, %s622_s25  ;;  %s202_s6 = sshll.u32 %s194_s5, 4  ;;  %s203_s6 = int_to_ptr.vmem [resolvable:$true] %s202_s6 }
  0x28   : > { %p1039_p2 = pnand %p697_p0, %p1016_p12  ;;  %s191_s30 = scalar_lea.sflag [#allocation3], %s190_s11 }
  0x29   : > { %s804_s10 = scalar_lea.vmem %s203_s6, 512  ;;  %s908_s7 = smov [#allocation2]  }
  0x2a   : > { %p793_p3 = pneg %p1039_p2  ;;  %p805_p5 = scmp.ne.s32.totalorder %s203_s6, %s804_s10 }
  0x2b   : > { %s809_s4 = sshll.u32 %s908_s7, 4  ;;  %s810_s4 = int_to_ptr.vmem [resolvable:$false] %s809_s4 }
  0x2c   : > { %p807_p7 = pnand %p805_p5, %p793_p3  ;;  %s811_s25 = scalar_lea.vmem %s810_s4, 1024 }
  0x2d   : > { %p812_p6 = scmp.lt.s32.totalorder %s203_s6, %s810_s4  ;;  %p813_p9 = scmp.lt.s32.totalorder %s811_s25, %s804_s10 }
  0x2e   : > { %p808_p4 = pneg %p807_p7 }
  0x2f   : > { %p814_p11 = por %p813_p9, %p812_p6 }
  0x31   : > { %p815_p10 = pnand %p814_p11, %p808_p4 }
  0x33   : > { %818 = shalt.err (!%p815_p10)
}
  0x34   : > { %s1145_s8 = smov 4   ;;  %s1146_s18 = smov 64  }
  0x35   : > { %691 = dma.hbm_to_vmem [thread:$0]  (!%p1039_p2), %s201_s29, 512, %s203_s6, %s191_s30, %s1146_s18, %s1146_s18, %s1145_s8  }
  0x36   : > { %214 = sbr.rel (%p986_p8) target bundleno = 310 (0x136), region = 32  ;;  %s1053_s11 = sand.u32 (!%p986_p8), 1, %s887_s13  }
  0x37   : > { %s601_s4 = sshll.u32 (!%p986_p8), %s1053_s11, 5  ;;  %s217_s26 = scalar_lea.sflag (!%p986_p8), [#allocation3], %s1053_s11 }
  0x38   : > { %s1057_s27 = scalar_lea.vmem (!%p986_p8), [#allocation2], %s601_s4  ;;  %p1147_p10 = scmp.ne.s32.totalorder (!%p986_p8), %s1138_s22, 0 }
  0x3b   : > { %870 = dma.done.wait (%p1147_p10), %s217_s26, 512  }
  0x3c   : > { %872 = vsyncadd (%p1147_p10), %s217_s26, 4294966784 }
  0x3d   : > { %874 = dma.done.wait (%p966_p1), [#allocation6], 1024  }
  0x3e   : > { %876 = vsyncadd (%p966_p1), [#allocation6], 4294966272  ;;  %v753_v0 = vld [vmem:[#allocation5 + $0x38] sm:$0xff]   ;;  %v754_v1 = vld [vmem:[#allocation5 + $0x30] sm:$0xff]   ;;  %s603_s20 = sshll.u32 %s1053_s11, 6  ;;  %s623_s29 = sshll.u32 %s895_s15, 10 }
  0x3f   : > { %636 = vmatprep.subr.bf16.mxu0 %v753_v0  ;;  %660 = vmatprep.subr.bf16.mxu1 %v753_v0  ;;  %v755_v2 = vld [vmem:[#allocation5 + $0x28] sm:$0xff]   ;;  %v756_v3 = vld [vmem:[#allocation5 + $0x20] sm:$0xff]   ;;  %v762_v5 = vld [vmem:[%s1057_s27 + $0x10] sm:$0xff]   ;;  %s249_s30 = scalar_lea.vmem [#allocation7], %s603_s20  ;;  %s1079_s10 = scalar_lea.hbm %s1132_s3, %s623_s29 }
  0x40   : > { %637 = vmatpush3.bf16.msra.mxu0 %v753_v0  ;;  %668 = vmatpush3.bf16.msra.mxu1 %v753_v0  ;;  %v761_v4 = vld [vmem:[%s1057_s27] sm:$0xff]   ;;  %v757_v6 = vld [vmem:[#allocation5 + $0x18] sm:$0xff]   ;;  %v758_v7 = vld [vmem:[#allocation5 + $0x10] sm:$0xff]   ;;  %s477_s5 = sshll.u32 %s249_s30, 4  ;;  %s463_s15 = scalar_lea.sflag [#allocation4], %s1053_s11  ;;  %s1081_s5 = int_to_ptr.vmem [resolvable:$true] %s477_s5 }
  0x41   : > { %638 = vmatprep.subr.bf16.mxu0 %v754_v1  ;;  %661 = vmatprep.subr.bf16.mxu1 %v754_v1  ;;  %v759_v8 = vld [vmem:[#allocation5 + $0x8] sm:$0xff]   ;;  %v760_v9 = vld [vmem:[#allocation5] sm:$0xff]   ;;  %v764_v11 = vld [vmem:[%s1057_s27 + $0x18] sm:$0xff]   ;;  %s819_s7 = scalar_lea.vmem %s1081_s5, 1024  ;;  %s909_s25 = smov [#allocation7]  }
  0x42   : > { %652 = vmatprep.mubr.bf16.mxu0 %v761_v4  ;;  %656 = vmatprep.mubr.bf16.mxu1 %v762_v5  ;;  %v763_v10 = vld [vmem:[%s1057_s27 + $0x8] sm:$0xff]   ;;  %v604_v12 = vld [vmem:[%s1131_s2] ss:$0 sm:$0xff]  ;;  %p820_p1 = scmp.ne.s32.totalorder %s1081_s5, %s819_s7  ;;  %s823_s8 = sshll.u32 %s909_s25, 4  ;;  %s824_s8 = int_to_ptr.vmem [resolvable:$false] %s823_s8 }
  0x43   : > { %s825_s18 = scalar_lea.vmem %s824_s8, 2048  ;;  %p826_p0 = scmp.lt.s32.totalorder %s1081_s5, %s824_s8 }
  0x44   : > { %639 = vmatpush3.bf16.msra.mxu0 %v754_v1  ;;  %669 = vmatpush3.bf16.msra.mxu1 %v754_v1  ;;  %p821_p8 = pnand %p820_p1, %p1022_p13  ;;  %p827_p2 = scmp.lt.s32.totalorder %s825_s18, %s819_s7 }
  0x45   : > { %640 = vmatprep.subr.bf16.mxu0 %v755_v2  ;;  %662 = vmatprep.subr.bf16.mxu1 %v755_v2 }
  0x46   : > { %p822_p12 = pneg %p821_p8  ;;  %p828_p3 = por %p827_p2, %p826_p0 }
  0x48   : > { %641 = vmatpush3.bf16.msra.mxu0 %v755_v2  ;;  %670 = vmatpush3.bf16.msra.mxu1 %v755_v2  ;;  %p829_p5 = pnand %p828_p3, %p822_p12 }
  0x49   : > { %642 = vmatprep.subr.bf16.mxu0 %v756_v3  ;;  %663 = vmatprep.subr.bf16.mxu1 %v756_v3 }
  0x4c   : > { %643 = vmatpush3.bf16.msra.mxu0 %v756_v3  ;;  %671 = vmatpush3.bf16.msra.mxu1 %v756_v3 }
  0x4d   : > { %644 = vmatprep.subr.bf16.mxu0 %v757_v6  ;;  %664 = vmatprep.subr.bf16.mxu1 %v757_v6 }
  0x50   : > { %645 = vmatpush3.bf16.msra.mxu0 %v757_v6  ;;  %672 = vmatpush3.bf16.msra.mxu1 %v757_v6 }
  0x51   : > { %646 = vmatprep.subr.bf16.mxu0 %v758_v7  ;;  %665 = vmatprep.subr.bf16.mxu1 %v758_v7 }
  0x54   : > { %647 = vmatpush3.bf16.msra.mxu0 %v758_v7  ;;  %673 = vmatpush3.bf16.msra.mxu1 %v758_v7 }
  0x55   : > { %648 = vmatprep.subr.bf16.mxu0 %v759_v8  ;;  %666 = vmatprep.subr.bf16.mxu1 %v759_v8 }
  0x58   : > { %649 = vmatpush3.bf16.msra.mxu0 %v759_v8  ;;  %674 = vmatpush3.bf16.msra.mxu1 %v759_v8 }
  0x59   : > { %650 = vmatprep.subr.bf16.mxu0 %v760_v9  ;;  %667 = vmatprep.subr.bf16.mxu1 %v760_v9 }
  0x5c   : > { %651 = vmatpush3.bf16.msra.mxu0 %v760_v9  ;;  %675 = vmatpush3.bf16.msra.mxu1 %v760_v9 }
  0x5f   : > { %653 = vmatmul.mubr.bf16.vlgmr.msra.gmra.mxu0 %v763_v10  ;;  %657 = vmatmul.mubr.bf16.vlgmr.msra.gmra.mxu1 %v764_v11 }
 0x11f   : > { %v654_v13 = vpop.f32.mrf.mxu0  ;;  %v658_v14 = vpop.f32.mrf.mxu1 }
 0x120   : > { %v448_v15 = vadd.f32 %v654_v13, %v604_v12  ;;  %v452_v16 = vadd.f32 %v658_v14, %v604_v12 }
 0x121   : > { %v415_v17 = vpop.f32.mrf.mxu0  ;;  %v431_v18 = vpop.f32.mrf.mxu1 }
 0x122   : > { %456 = vst [vmem:[%s249_s30 + $0x10] sm:$0xff] %v448_v15  ;;  %460 = vst [vmem:[%s249_s30 + $0x30] sm:$0xff] %v452_v16  ;;  %v446_v19 = vadd.f32 %v604_v12, %v415_v17  ;;  %v450_v20 = vadd.f32 %v604_v12, %v431_v18 }
 0x123   : > { %v655_v21 = vpop.f32.mrf.mxu0  ;;  %v659_v22 = vpop.f32.mrf.mxu1 }
 0x124   : > { %454 = vst [vmem:[%s249_s30] sm:$0xff] %v446_v19  ;;  %458 = vst [vmem:[%s249_s30 + $0x20] sm:$0xff] %v450_v20  ;;  %v449_v23 = vadd.f32 %v655_v21, %v604_v12  ;;  %v453_v24 = vadd.f32 %v659_v22, %v604_v12 }
 0x125   : > { %v418_v25 = vpop.f32.mrf.mxu0  ;;  %v434_v26 = vpop.f32.mrf.mxu1 }
 0x126   : > { %457 = vst [vmem:[%s249_s30 + $0x18] sm:$0xff] %v449_v23  ;;  %461 = vst [vmem:[%s249_s30 + $0x38] sm:$0xff] %v453_v24  ;;  %v447_v27 = vadd.f32 %v604_v12, %v418_v25  ;;  %v451_v28 = vadd.f32 %v604_v12, %v434_v26 }
 0x128   : > { %455 = vst [vmem:[%s249_s30 + $0x8] sm:$0xff] %v447_v27  ;;  %459 = vst [vmem:[%s249_s30 + $0x28] sm:$0xff] %v451_v28 }
 0x129   : > { %832 = shalt.err (!%p829_p5)
}
 0x12a   : > { %s833_s4 = scalar_lea.hbm %s1079_s10, 1024  ;;  %s837_s20 = scalar_lea.hbm %s1132_s3, 2048 }
 0x12b   : > { %p834_p7 = scmp.ne.s32.totalorder %s1079_s10, %s833_s4  ;;  %p838_p9 = scmp.lt.s32.totalorder %s1079_s10, %s1132_s3 }
 0x12c   : > { %p839_p11 = scmp.lt.s32.totalorder %s837_s20, %s833_s4 }
 0x12d   : > { %p835_p4 = pnand %p834_p7, %p1022_p13 }
 0x12e   : > { %p840_p10 = por %p839_p11, %p838_p9 }
 0x12f   : > { %p836_p6 = pneg %p835_p4 }
 0x131   : > { %p841_p1 = pnand %p840_p10, %p836_p6 }
 0x133   : > { %844 = shalt.err (!%p841_p1)
}
 0x134   : > { %s910_s30 = smov 128   ;;  %s911_s29 = smov 8  }
 0x135   : > { %682 = dma.vmem_to_hbm [thread:$0]  (%p1022_p13), %s1081_s5, 1024, %s1079_s10, %s463_s15, %s910_s30, %s910_s30, %s911_s29  }
 0x136 PF: > { %s492_s6 = sand.u32 1, %s883_s12   ;;  %p1148_p8 = scmp.ne.s32.totalorder %s1139_s23, 0 }
 0x137   : > { %p1149_p12 = scmp.ge.s32.totalorder %s903_s17, 2  ;;  %s493_s21 = scalar_lea.sflag [#allocation4], %s492_s6 }
 0x139   : > { %p693_p0 = pnand %p1149_p12, %p1148_p8 }
 0x13b   : > { %p694_p2 = pneg %p693_p0 }
 0x13d   : > { %878 = dma.done.wait (%p694_p2), %s493_s21, 1024  }
 0x13e   : > { %880 = vsyncadd (%p694_p2), %s493_s21, 4294966272  ;;  %s20_s17 = sadd.s32 1, %s903_s17   ;;  %s1150_s12 = smov %s887_s13 }
 0x13f   : > { %p17_p3 = scmp.ge.s32.totalorder %s20_s17, 4   ;;  %s1151_s13 = smov %s891_s14 }
 0x140   : > { %s1152_s14 = smov %s1031_s19  ;;  %s1153_s15 = smov %s899_s16 }
 0x141   : > { %s1154_s16 = smov %s1156_s28  ;;  %19 = sbr.rel (!%p17_p3) target bundleno = 7 (0x7), region = 89 }
 0x146   :  { %498 = vsyncpa [#allocation3], 1 }
 0x147   :  { %500 = vsyncpa [#allocation3 + $0x1], 1 }
 0x148   :  { %501 = vsyncpa [#allocation6], 1 }
 0x149   :  { %502 = vsyncpa [#allocation4], 1 }
 0x14a   :  { %504 = vsyncpa [#allocation4 + $0x1], 1 }

</bundles_post_ra>
